<compile_context>
chip_gen: v5e
topology: v5e:2x2
jax: 0.10.0
libtpu: 0.0.40
codegen_flags: <defaults>
</compile_context>

<pallas_src>
import jax
import jax.numpy as jnp
from jax.experimental import pallas as pl
from jax.experimental.pallas import tpu as pltpu


def _round_up(x, n):
    return (x + n - 1) // n * n


def _mlp_predictor_kernel(x_ref, w_ref, b_ref, o_ref):
    # MXU matmul with f32 accumulation (bf16 operands), bias add on VPU,
    # exp + reciprocal on EUP.
    acc = jnp.dot(x_ref[...], w_ref[...], preferred_element_type=jnp.float32)
    z = acc + b_ref[...]                       # bias broadcast over rows (f32)
    sig = pl.reciprocal(1.0 + jnp.exp(-z), approx=True)
    o_ref[...] = sig.astype(o_ref.dtype)


def mlp_predictor(x, weight, bias, *, tm_max=8192):
    """Forward pass of MLPPredictor.

    Args:
      x:      [..., embed_dim] float array.
      weight: [embed_dim, out_dim] (transpose of torch's Linear weight).
      bias:   [out_dim].
      tm_max: max row-tile size (multiple of 8).
    Returns:
      [..., out_dim], same dtype as x.
    """
    *lead, embed_dim = x.shape
    out_dim = weight.shape[1]
    m = 1
    for d in lead:
        m *= d
    m = max(m, 1)

    # bf16 operands for the MXU; f32 accumulation inside the kernel.
    x2d = x.reshape(m, embed_dim).astype(jnp.bfloat16)
    w = weight.astype(jnp.bfloat16)
    b2d = bias.astype(jnp.float32).reshape(1, out_dim)

    # --- Row tiling: no padding of M; ragged last block is masked by Pallas.
    if m <= 8:
        tm = m                                   # full-dim block (legal)
    else:
        # >= 2 grid steps (v7x 2-TC), tm a multiple of 8, capped by tm_max.
        tm = min(tm_max, _round_up(pl.cdiv(m, 2), 8))
    grid = (pl.cdiv(m, tm),)

    out_itemsize = jnp.dtype(x.dtype).itemsize
    cost = pl.CostEstimate(
        flops=2 * m * embed_dim * out_dim,
        transcendentals=m * out_dim,             # exp per output element
        bytes_accessed=(m * embed_dim * 2        # x (bf16)
                        + embed_dim * out_dim * 2  # weight (bf16)
                        + out_dim * 4              # bias (f32)
                        + m * out_dim * out_itemsize),  # output
    )

    out = pl.pallas_call(
        _mlp_predictor_kernel,
        out_shape=jax.ShapeDtypeStruct((m, out_dim), x.dtype),
        grid_spec=pltpu.PrefetchScalarGridSpec(
            num_scalar_prefetch=0,
            grid=grid,
            in_specs=[
                # x: one row tile per grid step (software-pipelined).
                pl.BlockSpec((tm, embed_dim), lambda i: (i, 0)),
                # weight: single block, resident in VMEM across all steps.
                pl.BlockSpec((embed_dim, out_dim), lambda i: (0, 0)),
                # bias: single tiny resident block.
                pl.BlockSpec((1, out_dim), lambda i: (0, 0)),
            ],
            out_specs=pl.BlockSpec((tm, out_dim), lambda i: (i, 0)),
        ),
        compiler_params=pltpu.CompilerParams(
            dimension_semantics=("parallel",)),   # shard row tiles on v7x 2-TC
        cost_estimate=cost,
    )(x2d, w, b2d)

    return out.reshape(*lead, out_dim)


if __name__ == "__main__":
    # Module hyperparams (small, consistent with the PyTorch module):
    embed_dim = 32
    hidden_dim = 64
    blk_size = 4
    assert hidden_dim % blk_size == 0
    out_dim = hidden_dim // blk_size  # = 16

    batch, seq = 2, 8

    key = jax.random.PRNGKey(0)
    kx, kw, kb = jax.random.split(key, 3)

    # Deterministic parameter init (synthetic, mimics nn.Linear uniform init).
    bound = 1.0 / (embed_dim ** 0.5)
    weight = jax.random.uniform(
        kw, (embed_dim, out_dim), jnp.float32, -bound, bound)
    bias = jax.random.uniform(kb, (out_dim,), jnp.float32, -bound, bound)

    x = jax.random.normal(kx, (batch, seq, embed_dim), jnp.float32)

    y = jax.block_until_ready(mlp_predictor(x, weight, bias))

    # Reference check in plain JAX (f32); tolerance loosened for the bf16
    # operand cast and approx reciprocal.
    y_ref = jax.nn.sigmoid(x @ weight + bias)
    assert y.shape == (batch, seq, out_dim)
    assert jnp.allclose(y, y_ref, atol=2e-2, rtol=2e-2), float(
        jnp.max(jnp.abs(y - y_ref)))

    print("KERNEL_OK")
</pallas_src>

<mosaic_0001>
module attributes {stable_mosaic.version = 11 : i64} {
  func.func @_mlp_predictor_kernel(%arg0: i32, %arg1: memref<8x32xbf16, #tpu.memory_space<vmem>>, %arg2: memref<32x16xbf16, #tpu.memory_space<vmem>>, %arg3: memref<1x16xf32, #tpu.memory_space<vmem>>, %arg4: memref<8x16xf32, #tpu.memory_space<vmem>>) attributes {dimension_semantics = [#tpu.dimension_semantics<parallel>], iteration_bounds = array<i64: 2>, scalar_prefetch = 0 : i64, scratch_operands = 0 : i64, tpu.core_type = #tpu.core_type<tc>, window_params = [{transform_indices = @transform_0, window_bounds = array<i64: 8, 32>}, {pipeline_mode = #tpu.pipeline_mode<synchronous>, transform_indices = @transform_1, window_bounds = array<i64: 32, 16>}, {pipeline_mode = #tpu.pipeline_mode<synchronous>, transform_indices = @transform_2, window_bounds = array<i64: 1, 16>}, {transform_indices = @transform_3, window_bounds = array<i64: 8, 16>}]} {
    %c0 = arith.constant 0 : index
    %c0_0 = arith.constant 0 : index
    %0 = vector.load %arg1[%c0, %c0_0] : memref<8x32xbf16, #tpu.memory_space<vmem>>, vector<8x32xbf16>
    %c0_1 = arith.constant 0 : index
    %c0_2 = arith.constant 0 : index
    %1 = vector.load %arg2[%c0_1, %c0_2] : memref<32x16xbf16, #tpu.memory_space<vmem>>, vector<32x16xbf16>
    %cst = arith.constant dense<0.000000e+00> : vector<8x16xf32>
    %2 = tpu.matmul %0, %1, %cst {dimension_numbers = #tpu.dot_dimension_numbers<[1], [0], [0], [1], [0, 0, 1, 1], [], []>} : vector<8x32xbf16>, vector<32x16xbf16>, vector<8x16xf32> -> vector<8x16xf32>
    %c0_3 = arith.constant 0 : index
    %c0_4 = arith.constant 0 : index
    %3 = vector.load %arg3[%c0_3, %c0_4] : memref<1x16xf32, #tpu.memory_space<vmem>>, vector<1x16xf32>
    %4 = vector.broadcast %3 : vector<1x16xf32> to vector<8x16xf32>
    %5 = arith.addf %2, %4 : vector<8x16xf32>
    %cst_5 = arith.constant 0.000000e+00 : f32
    %6 = vector.broadcast %cst_5 : f32 to vector<8x16xf32>
    %7 = arith.subf %6, %5 : vector<8x16xf32>
    %8 = math.exp %7 : vector<8x16xf32>
    %cst_6 = arith.constant 1.000000e+00 : f32
    %9 = vector.broadcast %cst_6 : f32 to vector<8x16xf32>
    %10 = arith.addf %9, %8 : vector<8x16xf32>
    %11 = tpu.reciprocal %10 {approx = true} : vector<8x16xf32> -> vector<8x16xf32>
    %c0_7 = arith.constant 0 : index
    %c0_8 = arith.constant 0 : index
    %12 = vector.load %arg4[%c0_7, %c0_8] : memref<8x16xf32, #tpu.memory_space<vmem>>, vector<8x16xf32>
    tpu.vector_store %arg4[%c0_7, %c0_8], %11 {strides = array<i32>} : memref<8x16xf32, #tpu.memory_space<vmem>>, vector<8x16xf32>,
    return
  }
  func.func @transform_0(%arg0: i32) -> (i32, i32) {
    %c0_i32 = arith.constant 0 : i32
    %c0_i32_0 = arith.constant 0 : i32
    return %arg0, %c0_i32 : i32, i32
  }
  func.func @transform_1(%arg0: i32) -> (i32, i32) {
    %c0_i32 = arith.constant 0 : i32
    %c0_i32_0 = arith.constant 0 : i32
    %c0_i32_1 = arith.constant 0 : i32
    return %c0_i32, %c0_i32_0 : i32, i32
  }
  func.func @transform_2(%arg0: i32) -> (i32, i32) {
    %c0_i32 = arith.constant 0 : i32
    %c0_i32_0 = arith.constant 0 : i32
    %c0_i32_1 = arith.constant 0 : i32
    return %c0_i32, %c0_i32_0 : i32, i32
  }
  func.func @transform_3(%arg0: i32) -> (i32, i32) {
    %c0_i32 = arith.constant 0 : i32
    %c0_i32_0 = arith.constant 0 : i32
    return %arg0, %c0_i32 : i32, i32
  }
}

</mosaic_0001>

<bundles_post_ra>
// kernel: tpu_custom_call.1
= control target key start
LH: loop header
LB: loop body
LE: loop exit
PB: predicated region body
PF: predicated region fallthrough
CT: control target
= control target key end

     0   :  { %8 = vsyncpa [#allocation3], 0  ;;  %s530_s0 = inlined_call_operand.vmem [shape: bf16[16,32], index: 0, kind: input, shape index: {}]   ;;  %s531_s1 = inlined_call_operand.vmem [shape: bf16[32,16], index: 1, kind: input, shape index: {}]   ;;  %s532_s2 = inlined_call_operand.vmem [shape: f32[1,16], index: 2, kind: input, shape index: {}]   ;;  %s533_s3 = inlined_call_operand.hbm [shape: f32[16,16], index: 3, kind: output, shape index: {}]  }
   0x1   :  { %10 = vsyncpa [#allocation3 + $0x1], 0  ;;  %s436_s12 = smov 0   ;;  %s438_s13 = smov 0  }
   0x2   :  { %s440_s14 = smov 0   ;;  %s442_s15 = smov 0  }
   0x3 LB: > { %s457_s16 = sadd.s32 4294967295, %s414_s15   ;;  %s287_s17 = sadd.s32 4294967294, %s414_s15   ;;  %s414_s15 = sphi %s442_s15, %s539_s15   ;;  %s410_s14 = sphi %s440_s14, %s538_s14   ;;  %s406_s13 = sphi %s438_s13, %s537_s13   ;;  %s402_s12 = sphi %s436_s12, %s536_s12  }
   0x4   : > { %s461_s18 = sadd.s32 1, %s414_s15   ;;  %s91_s19 = sadd.s32 1, %s410_s14 }
   0x5   : > { %s88_s20 = ssub.s32 %s414_s15, %s461_s18  ;;  %p101_p0 = scmp.ne.s32.totalorder %s410_s14, %s406_s13 }
   0x6   : > { %p89_p1 = scmp.eq.s32.totalorder %s88_s20, 0  ;;  %p102_p2 = scmp.eq.s32.totalorder %s457_s16, 1 }
   0x7   : > { %p107_p3 = scmp.ne.s32.totalorder %s406_s13, %s402_s12  ;;  %p108_p4 = scmp.eq.s32.totalorder %s287_s17, 1 }
   0x8   : > { %s472_s21 = scalar_select %p89_p1, %s410_s14, %s91_s19  }
   0x9   : > { %p474_p5 = por %p102_p2, %p101_p0  ;;  %p478_p6 = por %p108_p4, %p107_p3 }
   0xa   : > { %p290_p7 = scmp.ge.s32.totalorder %s414_s15, 1  ;;  %p139_p8 = scmp.lt.s32.totalorder %s414_s15, 3 }
   0xc   : > { %p140_p9 = pnand %p290_p7, %p139_p8 }
   0xd   : > { %p162_p10 = scmp.lt.s32.totalorder (!%p140_p9), %s457_s16, 1  ;;  %s159_s8 = sand.u32 (!%p140_p9), 1, %s406_s13  }
   0xe   : > { %143 = sbr.rel (%p140_p9) target bundleno = 178 (0xb2), region = 32  ;;  %s291_s9 = sshll.u32 (!%p140_p9), %s159_s8, 3 }
   0xf   : > { %s303_s10 = sshll.u32 (!%p140_p9), %s457_s16, 3  ;;  %s161_s20 = scalar_lea.vmem (!%p140_p9), [#allocation2], %s291_s9 }
  0x10   : > { %s223_s19 = scalar_lea.hbm (!%p140_p9), %s533_s3, %s303_s10  ;;  %s225_s24 = sshll.u32 (!%p140_p9), %s161_s20, 4  ;;  %s226_s24 = int_to_ptr.vmem [resolvable:$true] %s225_s24 }
  0x11   : > { %s227_s25 = sshll.u32 (!%p140_p9), %s223_s19, 4  ;;  %s213_s26 = scalar_lea.sflag (!%p140_p9), [#allocation3], %s159_s8  ;;  %s228_s25 = int_to_ptr.hbm [resolvable:$true] %s227_s25 }
  0x12   : > { %s366_s27 = sshra.s32 (!%p140_p9), %s228_s25, 4  ;;  %s372_s30 = scalar_lea.hbm (!%p140_p9), %s533_s3, 16  ;;  %s367_s27 = int_to_ptr.hbm [resolvable:$true] %s366_s27 }
  0x13   : > { %v307_v0 = vld [vmem:[%s531_s1 + $0x8] sm:$0xff]  ;;  %v306_v1 = vld [vmem:[%s531_s1] sm:$0xff]  ;;  %s163_s28 = scalar_select %p162_p10, %s457_s16, 1  ;;  %vm188_vm0 = vcmask 261120   ;;  %vm210_vm1 = vcmask 130048  }
  0x14   : > { %198 = vmatpush.bf16.msra.mxu0 %v307_v0  ;;  %v347_v3 = vld [vmem:[%s532_s2] ss:$0 sm:$0xff]  ;;  %s368_s16 = scalar_lea.hbm %s367_s27, 8  ;;  %p373_p0 = scmp.lt.s32.totalorder %s367_s27, %s533_s3 }
  0x15   : > { %s292_s29 = sshll.u32 %s163_s28, 2  ;;  %p369_p11 = scmp.ne.s32.totalorder %s367_s27, %s368_s16 }
  0x16   : > { %s165_s5 = scalar_lea.vmem %s530_s0, %s292_s29  ;;  %p374_p1 = scmp.lt.s32.totalorder %s372_s30, %s368_s16 }
  0x17   : > { %v167_v2 = vld [vmem:[%s165_s5] sm:$0xf]  ;;  %p370_p12 = pnand %p369_p11, %p474_p5 }
  0x18   : > { %199 = vmatpush.bf16.msra.mxu0 %v306_v1  ;;  %p375_p2 = por %p374_p1, %p373_p0 }
  0x19   : > { %p371_p13 = pneg %p370_p12 }
  0x1b   : > { %301 = vmatmul.msk.bf16.vlgmr.msra.gmra.mxu0 %vm188_vm0, %v167_v2  ;;  %p376_p3 = pnand %p375_p2, %p371_p13 }
  0x98   : > { %v201_v4 = vpop.f32.mrf.mxu0 }
  0x99   : > { %v202_v5 = vadd.f32 %v347_v3, %v201_v4 }
  0x9b   : > { %v205_v6 = vsub.f32 0.0, %v202_v5 }
  0x9d   : > { %v206_v7 = vmul.f32 1.442695, %v205_v6 }
  0x9f   : > { %348 = vpow2.f32 %v206_v7 }
  0xa0   : > { %v203_v8 = vpop.f32.mrf.mxu0 }
  0xa5   : > { %v349_v9 = vpop.eup %348 }
  0xa6   : > { %v208_v10 = vadd.f32 1.0, %v349_v9 }
  0xa8   : > { %350 = vrcp.f32 %v208_v10 }
  0xae   : > { %v351_v11 = vpop.eup %350 }
  0xaf   : > { %211 = vst.msk [vmem:[%s161_s20] sm:$0xff] %vm210_vm1, %v351_v11 }
  0xb0   : > { %379 = shalt.err (!%p376_p3)
}
  0xb1   : > { %308 = dma.vmem_to_hbm [thread:$0]  (%p474_p5), %s226_s24, 128, %s228_s25, %s213_s26  }
  0xb2 PF: > { %p314_p4 = scmp.ge.s32.totalorder %s414_s15, 2  ;;  %s239_s6 = sand.u32 1, %s402_s12  }
  0xb3   : > { %s240_s7 = scalar_lea.sflag [#allocation3], %s239_s6 }
  0xb4   : > { %p311_p7 = pnand %p314_p4, %p478_p6 }
  0xb6   : > { %p312_p8 = pneg %p311_p7 }
  0xb8   : > { %397 = dma.done.wait (%p312_p8), %s240_s7, 128  }
  0xb9   : > { %399 = vsyncadd (%p312_p8), %s240_s7, 4294967168  ;;  %p13_p9 = scmp.ge.s32.totalorder %s461_s18, 4   ;;  %s536_s12 = smov %s406_s13 }
  0xba   : > { %s537_s13 = smov %s410_s14  ;;  %s538_s14 = smov %s472_s21 }
  0xbb   : > { %s539_s15 = smov %s461_s18  ;;  %15 = sbr.rel (!%p13_p9) target bundleno = 3 (0x3), region = 67 }
  0xc0   :  { %246 = vsyncpa [#allocation3], 1 }
  0xc1   :  { %248 = vsyncpa [#allocation3 + $0x1], 1 }

</bundles_post_ra>
